<compile_context>
chip_gen: v6e
topology: v6e:2x2x1
jax: 0.10.0
libtpu: 0.0.40
codegen_flags: <defaults>
</compile_context>

<pallas_src>
import functools

import jax
import jax.numpy as jnp
from jax.experimental import pallas as pl
from jax.experimental.pallas import tpu as pltpu


def _fused_gcn_kernel(adj_ref, x0_ref, w_ref, b_ref, out_ref,
                      act_ref, h_ref, acc_ref, *, tile):
    """Grid = (num_layers, row_tiles, k_tiles); k is the A@H reduction axis."""
    l = pl.program_id(0)
    i = pl.program_id(1)
    k = pl.program_id(2)
    num_layers = pl.num_programs(0)
    nk = pl.num_programs(2)

    # ---- once per layer (first row tile, first k tile): H = act @ W_l ----
    @pl.when((i == 0) & (k == 0))
    def _start_layer():
        @pl.when(l == 0)
        def _load_x0():
            act_ref[...] = x0_ref[...]
        h_ref[...] = jnp.dot(
            act_ref[...], w_ref[...],
            preferred_element_type=jnp.float32).astype(h_ref.dtype)

    # ---- accumulator init for this output row tile ----
    @pl.when(k == 0)
    def _init_acc():
        acc_ref[...] = jnp.zeros_like(acc_ref)

    # ---- partial product on the MXU: A[i, k] @ H[k, :]  (bf16 in, f32 acc) ----
    koff = pl.multiple_of(k * tile, tile)
    acc_ref[...] += jnp.dot(adj_ref[...], h_ref[pl.ds(koff, tile), :],
                            preferred_element_type=jnp.float32)

    # ---- finalize row tile: bias (+ ReLU on hidden layers), write results ----
    ioff = pl.multiple_of(i * tile, tile)

    def _finalize(apply_relu):
        y = acc_ref[...] + b_ref[...]
        if apply_relu:
            y = jnp.maximum(y, 0.0)
        # Next layer's input activation stays resident in VMEM (bf16).
        # (H for this layer is already computed, so overwriting act is safe.)
        act_ref[pl.ds(ioff, tile), :] = y.astype(act_ref.dtype)
        out_ref[...] = y  # last layer's writeback wins in HBM

    @pl.when((k == nk - 1) & (l < num_layers - 1))
    def _finalize_hidden():
        _finalize(apply_relu=True)

    @pl.when((k == nk - 1) & (l == num_layers - 1))
    def _finalize_last():
        _finalize(apply_relu=False)


def _pad2d(a, rows, cols):
    return jnp.pad(a, ((0, rows - a.shape[0]), (0, cols - a.shape[1])))


def gcn_forward(x, adj, params, *, tile=128, dropout_p=0.0, training=False):
    """Fused multi-layer GCN forward. x: [N, C_in] f32, adj: [N, N] dense 0/1."""
    # TODO(synk): training-mode dropout not implemented (inference: identity).
    del dropout_p, training

    n = x.shape[0]
    num_layers = len(params)
    c_out_real = params[-1][0].shape[1]

    # Lane-dense channel padding (multiple of 128) shared by every layer;
    # zero padding is mathematically exact.
    max_c = max([x.shape[1]] + [w.shape[1] for w, _ in params])
    c_pad = ((max_c + 127) // 128) * 128
    n_pad = ((n + tile - 1) // tile) * tile

    # bf16 operands for native MXU rate (0/1 adjacency is exact in bf16);
    # f32 accumulation happens inside the kernel.
    adj_p = _pad2d(adj, n_pad, n_pad).astype(jnp.bfloat16)
    x_p = _pad2d(x, n_pad, c_pad).astype(jnp.bfloat16)
    w_all = jnp.stack([_pad2d(w, c_pad, c_pad) for w, _ in params]
                      ).astype(jnp.bfloat16)
    b_all = jnp.stack([_pad2d(b, 1, c_pad) for _, b in params]
                      ).astype(jnp.float32)

    ni = n_pad // tile
    nk = n_pad // tile

    flops = num_layers * (2 * n_pad * c_pad * c_pad + 2 * n_pad * n_pad * c_pad)
    bytes_accessed = (num_layers * adj_p.size * 2 + x_p.size * 2
                      + w_all.size * 2 + b_all.size * 4 + n_pad * c_pad * 4)

    out = pl.pallas_call(
        functools.partial(_fused_gcn_kernel, tile=tile),
        out_shape=jax.ShapeDtypeStruct((n_pad, c_pad), jnp.float32),
        grid=(num_layers, ni, nk),
        in_specs=[
            # adjacency tile A[i, k]: streamed / double-buffered per grid step
            pl.BlockSpec((tile, tile), lambda l, i, k: (i, k)),
            # padded input features: constant block index -> DMA'd once, resident
            pl.BlockSpec((n_pad, c_pad), lambda l, i, k: (0, 0)),
            # per-layer weight / bias: re-fetched only when l changes
            pl.BlockSpec((None, c_pad, c_pad), lambda l, i, k: (l, 0, 0)),
            pl.BlockSpec((None, 1, c_pad), lambda l, i, k: (l, 0, 0)),
        ],
        out_specs=pl.BlockSpec((tile, c_pad), lambda l, i, k: (i, 0)),
        scratch_shapes=[
            pltpu.VMEM((n_pad, c_pad), jnp.bfloat16),   # act  (current layer input)
            pltpu.VMEM((n_pad, c_pad), jnp.bfloat16),   # h = act @ W (per layer)
            pltpu.VMEM((tile, c_pad), jnp.float32),     # f32 accumulator
        ],
        # Layer and reduction axes are sequential; row tiles share the resident
        # activation scratch, so keep everything "arbitrary".
        compiler_params=pltpu.CompilerParams(
            dimension_semantics=("arbitrary", "arbitrary", "arbitrary"),
        ),
        cost_estimate=pl.CostEstimate(
            flops=flops, transcendentals=0, bytes_accessed=bytes_accessed),
    )(adj_p, x_p, w_all, b_all)

    return out[:n, :c_out_real]


def init_gcn_params(key, in_channels, hidden_channels, out_channels, num_layers):
    """Deterministic Glorot-uniform weights + zero bias per GCNConv layer."""
    dims = [in_channels] + [hidden_channels] * (num_layers - 1) + [out_channels]
    params = []
    for li in range(num_layers):
        c_in, c_out = dims[li], dims[li + 1]
        key, sub = jax.random.split(key)
        limit = jnp.sqrt(6.0 / (c_in + c_out))
        w = jax.random.uniform(sub, (c_in, c_out), jnp.float32, -limit, limit)
        b = jnp.zeros((1, c_out), jnp.float32)
        params.append((w, b))
    return params


if __name__ == "__main__":
    key = jax.random.PRNGKey(0)

    N = 128
    in_channels, hidden_channels, out_channels, num_layers = 8, 32, 16, 3

    k_x, k_adj, k_p = jax.random.split(key, 3)
    x = jax.random.normal(k_x, (N, in_channels), jnp.float32)

    # Dense symmetric 0/1 adjacency (unnormalized, since normalize=False).
    a = (jax.random.uniform(k_adj, (N, N)) < 0.05).astype(jnp.float32)
    adj = jnp.maximum(a, a.T)

    params = init_gcn_params(k_p, in_channels, hidden_channels, out_channels,
                             num_layers)

    out = jax.block_until_ready(gcn_forward(x, adj, params))
    assert out.shape == (N, out_channels)

    # Precision-matched pure-JAX reference (bf16 operands, f32 accumulation).
    adj_bf = adj.astype(jnp.bfloat16)
    act = x.astype(jnp.bfloat16)
    ref = None
    for li, (w, b) in enumerate(params):
        h = jnp.dot(act, w.astype(jnp.bfloat16),
                    preferred_element_type=jnp.float32).astype(jnp.bfloat16)
        y = jnp.dot(adj_bf, h, preferred_element_type=jnp.float32) + b
        if li < num_layers - 1:
            y = jnp.maximum(y, 0.0)
        act = y.astype(jnp.bfloat16)
        ref = y
    assert jnp.allclose(out, ref, atol=5e-2, rtol=5e-2), float(
        jnp.max(jnp.abs(out - ref)))

    # Full-f32 semantic reference: aggregate relative error from bf16 stays small.
    ref32 = x
    for li, (w, b) in enumerate(params):
        ref32 = adj @ (ref32 @ w) + b
        if li < num_layers - 1:
            ref32 = jnp.maximum(ref32, 0.0)
    rel_err = float(jnp.linalg.norm(out - ref32) / jnp.linalg.norm(ref32))
    assert rel_err < 5e-2, rel_err

    print("KERNEL_OK")
</pallas_src>

<mosaic_0001>
module attributes {stable_mosaic.version = 11 : i64} {
  func.func @_fused_gcn_kernel(%arg0: i32, %arg1: i32, %arg2: i32, %arg3: memref<128x128xbf16, #tpu.memory_space<vmem>>, %arg4: memref<128x128xbf16, #tpu.memory_space<vmem>>, %arg5: memref<1x128x128xbf16, #tpu.memory_space<vmem>>, %arg6: memref<1x1x128xf32, #tpu.memory_space<vmem>>, %arg7: memref<128x128xf32, #tpu.memory_space<vmem>>, %arg8: memref<128x128xbf16, #tpu.memory_space<vmem>>, %arg9: memref<128x128xbf16, #tpu.memory_space<vmem>>, %arg10: memref<128x128xf32, #tpu.memory_space<vmem>>) attributes {dimension_semantics = [#tpu.dimension_semantics<arbitrary>, #tpu.dimension_semantics<arbitrary>, #tpu.dimension_semantics<arbitrary>], iteration_bounds = array<i64: 3, 1, 1>, scalar_prefetch = 0 : i64, scratch_operands = 3 : i64, tpu.core_type = #tpu.core_type<tc>, window_params = [{transform_indices = @transform_0, window_bounds = array<i64: 128, 128>}, {pipeline_mode = #tpu.pipeline_mode<synchronous>, transform_indices = @transform_1, window_bounds = array<i64: 128, 128>}, {transform_indices = @transform_2, window_bounds = array<i64: 1, 128, 128>}, {transform_indices = @transform_3, window_bounds = array<i64: 1, 1, 128>}, {transform_indices = @transform_4, window_bounds = array<i64: 128, 128>}]} {
    %c0_i32 = arith.constant 0 : i32
    %0 = arith.cmpi eq, %arg1, %c0_i32 : i32
    %c0_i32_0 = arith.constant 0 : i32
    %1 = arith.cmpi eq, %arg2, %c0_i32_0 : i32
    %2 = arith.andi %0, %1 : i1
    %3 = arith.extui %2 : i1 to i32
    %c0_i32_1 = arith.constant 0 : i32
    %4 = arith.cmpi ne, %3, %c0_i32_1 : i32
    scf.if %4 {
      %c0_i32_16 = arith.constant 0 : i32
      %29 = arith.cmpi eq, %arg0, %c0_i32_16 : i32
      %30 = arith.extui %29 : i1 to i32
      %c0_i32_17 = arith.constant 0 : i32
      %31 = arith.cmpi ne, %30, %c0_i32_17 : i32
      scf.if %31 {
        %c0_26 = arith.constant 0 : index
        %c0_27 = arith.constant 0 : index
        %38 = vector.load %arg4[%c0_26, %c0_27] : memref<128x128xbf16, #tpu.memory_space<vmem>>, vector<128x128xbf16>
        %c0_28 = arith.constant 0 : index
        %c0_29 = arith.constant 0 : index
        %39 = vector.load %arg8[%c0_28, %c0_29] : memref<128x128xbf16, #tpu.memory_space<vmem>>, vector<128x128xbf16>
        tpu.vector_store %arg8[%c0_28, %c0_29], %38 {strides = array<i32>} : memref<128x128xbf16, #tpu.memory_space<vmem>>, vector<128x128xbf16>,
      } else {
      }
      %c0_18 = arith.constant 0 : index
      %c0_19 = arith.constant 0 : index
      %32 = vector.load %arg8[%c0_18, %c0_19] : memref<128x128xbf16, #tpu.memory_space<vmem>>, vector<128x128xbf16>
      %c0_20 = arith.constant 0 : index
      %c0_21 = arith.constant 0 : index
      %c0_22 = arith.constant 0 : index
      %33 = vector.load %arg5[%c0_20, %c0_21, %c0_22] : memref<1x128x128xbf16, #tpu.memory_space<vmem>>, vector<1x128x128xbf16>
      %34 = vector.shape_cast %33 : vector<1x128x128xbf16> to vector<128x128xbf16>
      %cst_23 = arith.constant dense<0.000000e+00> : vector<128x128xf32>
      %35 = tpu.matmul %32, %34, %cst_23 {dimension_numbers = #tpu.dot_dimension_numbers<[1], [0], [0], [1], [0, 0, 1, 1], [], []>} : vector<128x128xbf16>, vector<128x128xbf16>, vector<128x128xf32> -> vector<128x128xf32>
      %36 = arith.truncf %35 : vector<128x128xf32> to vector<128x128xbf16>
      %c0_24 = arith.constant 0 : index
      %c0_25 = arith.constant 0 : index
      %37 = vector.load %arg9[%c0_24, %c0_25] : memref<128x128xbf16, #tpu.memory_space<vmem>>, vector<128x128xbf16>
      tpu.vector_store %arg9[%c0_24, %c0_25], %36 {strides = array<i32>} : memref<128x128xbf16, #tpu.memory_space<vmem>>, vector<128x128xbf16>,
    } else {
    }
    %c0_i32_2 = arith.constant 0 : i32
    %5 = arith.cmpi eq, %arg2, %c0_i32_2 : i32
    %6 = arith.extui %5 : i1 to i32
    %c0_i32_3 = arith.constant 0 : i32
    %7 = arith.cmpi ne, %6, %c0_i32_3 : i32
    scf.if %7 {
      %cst_16 = arith.constant 0.000000e+00 : f32
      %29 = vector.broadcast %cst_16 : f32 to vector<128x128xf32>
      %c0_17 = arith.constant 0 : index
      %c0_18 = arith.constant 0 : index
      %30 = vector.load %arg10[%c0_17, %c0_18] : memref<128x128xf32, #tpu.memory_space<vmem>>, vector<128x128xf32>
      tpu.vector_store %arg10[%c0_17, %c0_18], %29 {strides = array<i32>} : memref<128x128xf32, #tpu.memory_space<vmem>>, vector<128x128xf32>,
    } else {
    }
    %c128_i32 = arith.constant 128 : i32
    %8 = arith.muli %arg2, %c128_i32 : i32
    %9 = tpu.assume_multiple %8, 128 : i32
    %c0 = arith.constant 0 : index
    %c0_4 = arith.constant 0 : index
    %10 = vector.load %arg10[%c0, %c0_4] : memref<128x128xf32, #tpu.memory_space<vmem>>, vector<128x128xf32>
    %c0_5 = arith.constant 0 : index
    %c0_6 = arith.constant 0 : index
    %11 = vector.load %arg3[%c0_5, %c0_6] : memref<128x128xbf16, #tpu.memory_space<vmem>>, vector<128x128xbf16>
    %12 = arith.index_cast %9 : i32 to index
    %c0_7 = arith.constant 0 : index
    %13 = vector.load %arg9[%12, %c0_7] : memref<128x128xbf16, #tpu.memory_space<vmem>>, vector<128x128xbf16>
    %cst = arith.constant dense<0.000000e+00> : vector<128x128xf32>
    %14 = tpu.matmul %11, %13, %cst {dimension_numbers = #tpu.dot_dimension_numbers<[1], [0], [0], [1], [0, 0, 1, 1], [], []>} : vector<128x128xbf16>, vector<128x128xbf16>, vector<128x128xf32> -> vector<128x128xf32>
    %15 = arith.addf %10, %14 : vector<128x128xf32>
    %c0_8 = arith.constant 0 : index
    %c0_9 = arith.constant 0 : index
    %16 = vector.load %arg10[%c0_8, %c0_9] : memref<128x128xf32, #tpu.memory_space<vmem>>, vector<128x128xf32>
    tpu.vector_store %arg10[%c0_8, %c0_9], %15 {strides = array<i32>} : memref<128x128xf32, #tpu.memory_space<vmem>>, vector<128x128xf32>,
    %c128_i32_10 = arith.constant 128 : i32
    %17 = arith.muli %arg1, %c128_i32_10 : i32
    %18 = tpu.assume_multiple %17, 128 : i32
    %c0_i32_11 = arith.constant 0 : i32
    %19 = arith.cmpi eq, %arg2, %c0_i32_11 : i32
    %c2_i32 = arith.constant 2 : i32
    %20 = arith.cmpi slt, %arg0, %c2_i32 : i32
    %21 = arith.andi %19, %20 : i1
    %22 = arith.extui %21 : i1 to i32
    %c0_i32_12 = arith.constant 0 : i32
    %23 = arith.cmpi ne, %22, %c0_i32_12 : i32
    scf.if %23 {
      %c0_16 = arith.constant 0 : index
      %c0_17 = arith.constant 0 : index
      %29 = vector.load %arg10[%c0_16, %c0_17] : memref<128x128xf32, #tpu.memory_space<vmem>>, vector<128x128xf32>
      %c0_18 = arith.constant 0 : index
      %c0_19 = arith.constant 0 : index
      %c0_20 = arith.constant 0 : index
      %30 = vector.load %arg6[%c0_18, %c0_19, %c0_20] : memref<1x1x128xf32, #tpu.memory_space<vmem>>, vector<1x1x128xf32>
      %31 = vector.shape_cast %30 : vector<1x1x128xf32> to vector<1x128xf32>
      %32 = vector.broadcast %31 : vector<1x128xf32> to vector<128x128xf32>
      %33 = arith.addf %29, %32 : vector<128x128xf32>
      %cst_21 = arith.constant 0.000000e+00 : f32
      %34 = vector.broadcast %cst_21 : f32 to vector<128x128xf32>
      %35 = arith.maximumf %33, %34 : vector<128x128xf32>
      %36 = arith.truncf %35 : vector<128x128xf32> to vector<128x128xbf16>
      %37 = arith.index_cast %18 : i32 to index
      %c0_22 = arith.constant 0 : index
      %38 = vector.load %arg8[%37, %c0_22] : memref<128x128xbf16, #tpu.memory_space<vmem>>, vector<128x128xbf16>
      tpu.vector_store %arg8[%37, %c0_22], %36 {strides = array<i32>} : memref<128x128xbf16, #tpu.memory_space<vmem>>, vector<128x128xbf16>,
      %c0_23 = arith.constant 0 : index
      %c0_24 = arith.constant 0 : index
      %39 = vector.load %arg7[%c0_23, %c0_24] : memref<128x128xf32, #tpu.memory_space<vmem>>, vector<128x128xf32>
      tpu.vector_store %arg7[%c0_23, %c0_24], %35 {strides = array<i32>} : memref<128x128xf32, #tpu.memory_space<vmem>>, vector<128x128xf32>,
    } else {
    }
    %c0_i32_13 = arith.constant 0 : i32
    %24 = arith.cmpi eq, %arg2, %c0_i32_13 : i32
    %c2_i32_14 = arith.constant 2 : i32
    %25 = arith.cmpi eq, %arg0, %c2_i32_14 : i32
    %26 = arith.andi %24, %25 : i1
    %27 = arith.extui %26 : i1 to i32
    %c0_i32_15 = arith.constant 0 : i32
    %28 = arith.cmpi ne, %27, %c0_i32_15 : i32
    scf.if %28 {
      %c0_16 = arith.constant 0 : index
      %c0_17 = arith.constant 0 : index
      %29 = vector.load %arg10[%c0_16, %c0_17] : memref<128x128xf32, #tpu.memory_space<vmem>>, vector<128x128xf32>
      %c0_18 = arith.constant 0 : index
      %c0_19 = arith.constant 0 : index
      %c0_20 = arith.constant 0 : index
      %30 = vector.load %arg6[%c0_18, %c0_19, %c0_20] : memref<1x1x128xf32, #tpu.memory_space<vmem>>, vector<1x1x128xf32>
      %31 = vector.shape_cast %30 : vector<1x1x128xf32> to vector<1x128xf32>
      %32 = vector.broadcast %31 : vector<1x128xf32> to vector<128x128xf32>
      %33 = arith.addf %29, %32 : vector<128x128xf32>
      %34 = arith.truncf %33 : vector<128x128xf32> to vector<128x128xbf16>
      %35 = arith.index_cast %18 : i32 to index
      %c0_21 = arith.constant 0 : index
      %36 = vector.load %arg8[%35, %c0_21] : memref<128x128xbf16, #tpu.memory_space<vmem>>, vector<128x128xbf16>
      tpu.vector_store %arg8[%35, %c0_21], %34 {strides = array<i32>} : memref<128x128xbf16, #tpu.memory_space<vmem>>, vector<128x128xbf16>,
      %c0_22 = arith.constant 0 : index
      %c0_23 = arith.constant 0 : index
      %37 = vector.load %arg7[%c0_22, %c0_23] : memref<128x128xf32, #tpu.memory_space<vmem>>, vector<128x128xf32>
      tpu.vector_store %arg7[%c0_22, %c0_23], %33 {strides = array<i32>} : memref<128x128xf32, #tpu.memory_space<vmem>>, vector<128x128xf32>,
    } else {
    }
    return
  }
  func.func @transform_0(%arg0: i32, %arg1: i32, %arg2: i32) -> (i32, i32) {
    %c0_i32 = arith.constant 0 : i32
    return %arg1, %arg2 : i32, i32
  }
  func.func @transform_1(%arg0: i32, %arg1: i32, %arg2: i32) -> (i32, i32) {
    %c0_i32 = arith.constant 0 : i32
    %c0_i32_0 = arith.constant 0 : i32
    %c0_i32_1 = arith.constant 0 : i32
    return %c0_i32, %c0_i32_0 : i32, i32
  }
  func.func @transform_2(%arg0: i32, %arg1: i32, %arg2: i32) -> (i32, i32, i32) {
    %c0_i32 = arith.constant 0 : i32
    %c0_i32_0 = arith.constant 0 : i32
    %c0_i32_1 = arith.constant 0 : i32
    return %arg0, %c0_i32, %c0_i32_0 : i32, i32, i32
  }
  func.func @transform_3(%arg0: i32, %arg1: i32, %arg2: i32) -> (i32, i32, i32) {
    %c0_i32 = arith.constant 0 : i32
    %c0_i32_0 = arith.constant 0 : i32
    %c0_i32_1 = arith.constant 0 : i32
    return %arg0, %c0_i32, %c0_i32_0 : i32, i32, i32
  }
  func.func @transform_4(%arg0: i32, %arg1: i32, %arg2: i32) -> (i32, i32) {
    %c0_i32 = arith.constant 0 : i32
    %c0_i32_0 = arith.constant 0 : i32
    return %arg1, %c0_i32 : i32, i32
  }
}

</mosaic_0001>

<bundles_post_ra>
// kernel: tpu_custom_call.1
= control target key start
LH: loop header
LB: loop body
LE: loop exit
PB: predicated region body
PF: predicated region fallthrough
CT: control target
= control target key end

     0   :  { %9 = vsyncpa [#allocation6], 0  ;;  %s2234_s0 = inlined_call_operand.hbm [shape: bf16[128,128], index: 0, kind: input, shape index: {}]   ;;  %s2235_s1 = inlined_call_operand.hbm [shape: bf16[128,128], index: 1, kind: input, shape index: {}]   ;;  %s2236_s2 = inlined_call_operand.hbm [shape: bf16[3,128,128], index: 2, kind: input, shape index: {}]   ;;  %s2237_s3 = inlined_call_operand.vmem [shape: f32[3,1,128], index: 3, kind: input, shape index: {}]   ;;  %s2238_s4 = inlined_call_operand.hbm [shape: f32[128,128], index: 4, kind: output, shape index: {}]  }
   0x1   :  { %10 = vsyncpa [#allocation9], 0 }
   0x2   :  { %11 = vsyncpa [#allocation7], 0  ;;  %s2056_s15 = smov 0   ;;  %s2058_s16 = smov 0  }
   0x3   :  { %s2060_s17 = smov 0   ;;  %s2062_s18 = smov 0  }
   0x4   :  { %s2064_s19 = smov 0   ;;  %s2066_s20 = smov 0  }
   0x5 LB: > { %s2085_s21 = sadd.s32 4294967295, %s2021_s20   ;;  %p99_p0 = scmp.ne.s32.totalorder %s2009_s17, %s2005_s16  ;;  %s2021_s20 = sphi %s2066_s20, %s17_s20   ;;  %s2017_s19 = sphi %s2064_s19, %s2254_s19   ;;  %s2013_s18 = sphi %s2062_s18, %s2253_s18   ;;  %s2009_s17 = sphi %s2060_s17, %s2252_s17   ;;  %s2005_s16 = sphi %s2058_s16, %s2251_s16   ;;  %s2001_s15 = sphi %s2056_s15, %s2250_s15  }
   0x6   : > { %p100_p1 = scmp.eq.s32.totalorder %s2021_s20, 0  ;;  %p105_p2 = scmp.ne.s32.totalorder %s2005_s16, %s2001_s15 }
   0x7   : > { %p2239_p3 = scmp.eq.s32.totalorder %s2085_s21, 0  ;;  %p1347_p4 = scmp.ge.s32.totalorder %s2021_s20, 1 }
   0x8   : > { %p101_p5 = por %p100_p1, %p99_p0  ;;  %p168_p6 = scmp.lt.s32.totalorder %s2021_s20, 4 }
   0x9   : > { %p2096_p7 = por %p2239_p3, %p105_p2  ;;  %s2023_s24 = smov [#allocation5]  }
   0xa   : > { %p2100_p8 = pnand %p1347_p4, %p168_p6  ;;  %s184_s25 = sshll.u32 %s2023_s24, 4  ;;  %s185_s25 = int_to_ptr.vmem [resolvable:$true] %s184_s25 }
   0xb   : > { %p1762_p11 = scmp.lt.s32.totalorder %s2021_s20, 3  ;;  %s1866_s28 = scalar_lea.vmem %s185_s25, 1024 }
   0xc   : > { %p1749_p9 = pneg %p2100_p8  ;;  %p1867_p0 = scmp.ne.s32.totalorder %s185_s25, %s1866_s28 }
   0xd   : > { %p2113_p12 = pnand %p1762_p11, %p101_p5  ;;  %p1874_p4 = scmp.lt.s32.totalorder %s185_s25, %s185_s25 }
   0xe   : > { %p2108_p10 = pnand %p1749_p9, %p2239_p3  ;;  %p1875_p6 = scmp.lt.s32.totalorder %s1866_s28, %s1866_s28 }
  0x10   : > { %p1857_p13 = pneg %p2108_p10  ;;  %p1876_p9 = por %p1875_p6, %p1874_p4 }
  0x12   : > { %p1869_p1 = pnand %p1867_p0, %p1857_p13 }
  0x14   : > { %p1870_p2 = pneg %p1869_p1 }
  0x16   : > { %p1877_p3 = pnand %p1876_p9, %p1870_p2 }
  0x18   : > { %1880 = shalt.err (!%p1877_p3)
}
  0x19   : > { %s2240_s29 = smov 64   ;;  %s2025_s30 = smov 4  }
  0x1a   : > { %1752 = dma.hbm_to_vmem [thread:$0]  (!%p2108_p10), %s2234_s0, 1024, %s185_s25, [#allocation6], %s2240_s29, %s2240_s29, %s2025_s30  }
  0x1b   : > { %s2026_s7 = smov [#allocation8]  }
  0x1c   : > { %s197_s8 = sshll.u32 %s2026_s7, 4  ;;  %s198_s8 = int_to_ptr.vmem [resolvable:$true] %s197_s8 }
  0x1d   : > { %s1892_s9 = scalar_lea.vmem %s198_s8, 1024  ;;  %p1900_p0 = scmp.lt.s32.totalorder %s198_s8, %s198_s8 }
  0x1e   : > { %p1893_p5 = scmp.ne.s32.totalorder %s198_s8, %s1892_s9  ;;  %p1901_p1 = scmp.lt.s32.totalorder %s1892_s9, %s1892_s9 }
  0x20   : > { %p1895_p3 = pnand %p1893_p5, %p1857_p13  ;;  %p1902_p2 = por %p1901_p1, %p1900_p0 }
  0x22   : > { %p1896_p11 = pneg %p1895_p3 }
  0x24   : > { %p1903_p4 = pnand %p1902_p2, %p1896_p11 }
  0x26   : > { %1906 = shalt.err (!%p1903_p4)
}
  0x27   : > { %1755 = dma.hbm_to_vmem [thread:$0]  (!%p2108_p10), %s2235_s1, 1024, %s198_s8, [#allocation9], %s2240_s29, %s2240_s29, %s2025_s30  }
  0x28   : > { %s36_s12 = sadd.s32 1, %s2017_s19  ;;  %s92_s13 = sadd.s32 1, %s2009_s17 }
  0x29   : > { %p38_p13 = scmp.ge.s32.totalorder %s36_s12, 3  ;;  %s211_s14 = sand.u32 1, %s2021_s20  }
  0x2a   : > { %s213_s15 = sand.u32 1, %s2009_s17   ;;  %s1447_s25 = sshll.u32 %s2017_s19, 10 }
  0x2b   : > { %s2256_s12 = smov (%p38_p13, %s36_s12), 0  ;;  %s1351_s24 = sshll.u32 %s213_s15, 6 }
  0x2c   : > { %s89_s26 = ssub.s32 %s2017_s19, %s2256_s12  ;;  %s221_s6 = scalar_lea.hbm %s2236_s2, %s1447_s25 }
  0x2d   : > { %p90_p6 = scmp.eq.s32.totalorder %s89_s26, 0  ;;  %s215_s7 = scalar_lea.vmem [#allocation10], %s1351_s24 }
  0x2e   : > { %s222_s9 = sshll.u32 %s215_s7, 4  ;;  %s212_s10 = scalar_lea.sflag [#allocation6], %s211_s14  ;;  %s223_s9 = int_to_ptr.vmem [resolvable:$true] %s222_s9 }
  0x2f   : > { %s2154_s8 = scalar_select %p90_p6, %s2009_s17, %s92_s13  }
  0x30   : > { %p1909_p10 = pneg %p2113_p12  ;;  %s1920_s11 = scalar_lea.vmem %s223_s9, 1024 }
  0x31   : > { %p1921_p9 = scmp.ne.s32.totalorder %s223_s9, %s1920_s11  ;;  %s2027_s15 = smov [#allocation10]  }
  0x32   : > { %s1925_s29 = sshll.u32 %s2027_s15, 4  ;;  %s1926_s29 = int_to_ptr.vmem [resolvable:$false] %s1925_s29 }
  0x33   : > { %p1923_p5 = pnand %p1921_p9, %p1909_p10  ;;  %s1927_s26 = scalar_lea.vmem %s1926_s29, 2048 }
  0x34   : > { %p1928_p11 = scmp.lt.s32.totalorder %s223_s9, %s1926_s29  ;;  %p1929_p0 = scmp.lt.s32.totalorder %s1927_s26, %s1920_s11 }
  0x35   : > { %p1924_p3 = pneg %p1923_p5 }
  0x36   : > { %p1930_p1 = por %p1929_p0, %p1928_p11 }
  0x38   : > { %p1931_p2 = pnand %p1930_p1, %p1924_p3 }
  0x3a   : > { %1934 = shalt.err (!%p1931_p2)
}
  0x3b   : > { %s2245_s13 = smov 64   ;;  %240 = sbr.rel (%p2100_p8) target bundleno = 652 (0x28c), region = 36 }
  0x3c   : > { %1759 = dma.hbm_to_vmem [thread:$0]  (!%p2113_p12), %s221_s6, 1024, %s223_s9, %s212_s10, %s2245_s13, %s2245_s13, %s2025_s30  }
  0x3d   : > { %p2246_p4 = scmp.eq.s32.totalorder (!%p2100_p8), %s2085_s21, 0 }
  0x40   : > { %1984 = dma.done.wait (%p2246_p4), [#allocation6], 1024   ;;  %p2247_p13 = pmov %p2246_p4 }
  0x41   : > { %p2248_p6 = pmov %p2246_p4 }
  0x42   : > { %1986 = vsyncadd (%p2247_p13), [#allocation6], 4294966272 }
  0x43   : > { %1988 = dma.done.wait (%p2248_p6), [#allocation9], 1024   ;;  %p2249_p10 = pmov %p2246_p4 }
  0x44   : > { %s250_s27 = sand.u32 1, %s2085_s21   ;;  %s252_s29 = sand.u32 1, %s2005_s16  }
  0x45   : > { %1990 = vsyncadd (%p2249_p10), [#allocation9], 4294966272  ;;  %s1357_s30 = sshll.u32 %s252_s29, 6  ;;  %s251_s23 = scalar_lea.sflag [#allocation6], %s250_s27 }
  0x46   : > { %s2175_s14 = scalar_lea.vmem [#allocation10], %s1357_s30 }
  0x47   : > { %1992 = dma.done.wait (%p2096_p7), %s251_s23, 1024  }
  0x48   : > { %1994 = vsyncadd (%p2096_p7), %s251_s23, 4294966272  ;;  %p278_p8 = scmp.lt.s32.totalorder %s2013_s18, 2  ;;  %p1358_p12 = scmp.ne.s32.totalorder %s2013_s18, 0 }
  0x4a   : > { %s279_s24 = scalar_select %p278_p8, %s2013_s18, 2 }
  0x4b   : > { %292 = sbr.rel (%p1358_p12) target bundleno = 85 (0x55), region = 56 }
  0x4c   : > { %s2188_s5 = scalar_lea.vmem %s2237_s3, %s279_s24 }
  0x50   : > { %v293_v0 = vld [vmem:[#allocation8] sm:$0xff]   ;;  %v295_v1 = vld [vmem:[#allocation8 + $0x8] sm:$0xff]   ;;  %v297_v2 = vld [vmem:[#allocation8 + $0x10] sm:$0xff]  }
  0x51   : > { %309 = vst [vmem:[#allocation2] sm:$0xff] %v293_v0   ;;  %311 = vst [vmem:[#allocation2 + $0x8] sm:$0xff] %v295_v1   ;;  %v299_v3 = vld [vmem:[#allocation8 + $0x18] sm:$0xff]   ;;  %v301_v4 = vld [vmem:[#allocation8 + $0x20] sm:$0xff]  }
  0x52   : > { %313 = vst [vmem:[#allocation2 + $0x10] sm:$0xff] %v297_v2   ;;  %v303_v5 = vld [vmem:[#allocation8 + $0x28] sm:$0xff]   ;;  %315 = vst [vmem:[#allocation2 + $0x18] sm:$0xff] %v299_v3   ;;  %v305_v6 = vld [vmem:[#allocation8 + $0x30] sm:$0xff]  }
  0x53   : > { %317 = vst [vmem:[#allocation2 + $0x20] sm:$0xff] %v301_v4   ;;  %319 = vst [vmem:[#allocation2 + $0x28] sm:$0xff] %v303_v5   ;;  %v307_v7 = vld [vmem:[#allocation8 + $0x38] sm:$0xff]  }
  0x54   : > { %321 = vst [vmem:[#allocation2 + $0x30] sm:$0xff] %v305_v6   ;;  %323 = vst [vmem:[#allocation2 + $0x38] sm:$0xff] %v307_v7  }
  0x55 PF: > { %v1823_v8 = vld [vmem:[%s2175_s14 + $0x38] sm:$0xff]   ;;  %v1824_v9 = vld [vmem:[%s2175_s14 + $0x30] sm:$0xff]   ;;  %v1825_v10 = vld [vmem:[%s2175_s14 + $0x28] sm:$0xff]  }
  0x56   : > { %1671 = vmatprep.subr.bf16.mxu0 %v1823_v8  ;;  %v1826_v11 = vld [vmem:[%s2175_s14 + $0x20] sm:$0xff]   ;;  %v1827_v13 = vld [vmem:[%s2175_s14 + $0x18] sm:$0xff]   ;;  %v1828_v14 = vld [vmem:[%s2175_s14 + $0x10] sm:$0xff]  }
  0x57   : > { %1672 = vmatpush3.bf16.msra.mxu0 %v1823_v8  ;;  %v1829_v15 = vld [vmem:[%s2175_s14 + $0x8] sm:$0xff]   ;;  %v1830_v16 = vld [vmem:[%s2175_s14] sm:$0xff]   ;;  %v1849_v58 = vld [vmem:[#allocation5 + $0x10] sm:$0xff]  }
  0x58   : > { %1673 = vmatprep.subr.bf16.mxu0 %v1824_v9  ;;  %v1831_v12 = vld [vmem:[#allocation2] sm:$0xff]   ;;  %v1832_v17 = vld [vmem:[#allocation2 + $0x8] sm:$0xff]   ;;  %v1850_v59 = vld [vmem:[#allocation5 + $0x18] sm:$0xff]  }
  0x59   : > { %1687 = vmatprep.mubr.bf16.mxu0 %v1831_v12  ;;  %v1833_v18 = vld [vmem:[#allocation2 + $0x10] sm:$0xff]   ;;  %v1834_v19 = vld [vmem:[#allocation2 + $0x18] sm:$0xff]   ;;  %v1847_v24 = vld [vmem:[#allocation5] sm:$0xff]  }
  0x5a   : > { %v1835_v20 = vld [vmem:[#allocation2 + $0x20] sm:$0xff]   ;;  %v1836_v21 = vld [vmem:[#allocation2 + $0x28] sm:$0xff]   ;;  %1719 = vmatprep.mubr.bf16.mxu1 %v1847_v24  ;;  %v1853_v62 = vld [vmem:[#allocation5 + $0x30] sm:$0xff]  }
  0x5b   : > { %1674 = vmatpush3.bf16.msra.mxu0 %v1824_v9  ;;  %v1837_v22 = vld [vmem:[#allocation2 + $0x30] sm:$0xff]   ;;  %v1838_v23 = vld [vmem:[#allocation2 + $0x38] sm:$0xff]   ;;  %v1848_v57 = vld [vmem:[#allocation5 + $0x8] sm:$0xff]  }
  0x5c   : > { %1675 = vmatprep.subr.bf16.mxu0 %v1825_v10  ;;  %v1851_v60 = vld [vmem:[#allocation5 + $0x20] sm:$0xff]   ;;  %v1852_v61 = vld [vmem:[#allocation5 + $0x28] sm:$0xff]   ;;  %v1854_v63 = vld [vmem:[#allocation5 + $0x38] sm:$0xff]  }
  0x5f   : > { %1676 = vmatpush3.bf16.msra.mxu0 %v1825_v10 }
  0x60   : > { %1677 = vmatprep.subr.bf16.mxu0 %v1826_v11 }
  0x63   : > { %1678 = vmatpush3.bf16.msra.mxu0 %v1826_v11 }
  0x64   : > { %1679 = vmatprep.subr.bf16.mxu0 %v1827_v13 }
  0x67   : > { %1680 = vmatpush3.bf16.msra.mxu0 %v1827_v13 }
  0x68   : > { %1681 = vmatprep.subr.bf16.mxu0 %v1828_v14 }
  0x6b   : > { %1682 = vmatpush3.bf16.msra.mxu0 %v1828_v14 }
  0x6c   : > { %1683 = vmatprep.subr.bf16.mxu0 %v1829_v15 }
  0x6f   : > { %1684 = vmatpush3.bf16.msra.mxu0 %v1829_v15 }
  0x70   : > { %1685 = vmatprep.subr.bf16.mxu0 %v1830_v16 }
  0x73   : > { %1686 = vmatpush3.bf16.msra.mxu0 %v1830_v16 }
  0x76   : > { %1688 = vmatmul.mubr.bf16.vlgmr.msra.gmra.mxu0 %v1832_v17 }
  0x77   : > { %1691 = vmatprep.mubr.bf16.mxu0 %v1833_v18  ;;  %v1408_v18 = vld [vmem:[%s2188_s5] ss:$0 sm:$0xff] (%p278_p8) }
  0x7e   : > { %1692 = vmatmul.mubr.bf16.gmra.mxu0 %v1834_v19 }
  0x7f   : > { %1695 = vmatprep.mubr.bf16.mxu0 %v1835_v20 }
  0x86   : > { %1696 = vmatmul.mubr.bf16.gmra.mxu0 %v1836_v21 }
  0x87   : > { %1699 = vmatprep.mubr.bf16.mxu0 %v1837_v22 }
  0x8e   : > { %1700 = vmatmul.mubr.bf16.gmra.mxu0 %v1838_v23 }
 0x136   : > { %v1689_v25 = vpop.f32.mrf.mxu0 }
 0x138   : > { %v487_v26 = vpop.f32.mrf.mxu0 }
 0x13a   : > { %v1690_v27 = vpop.f32.mrf.mxu0 }
 0x13b   : > { %v1506_v28 = vpack.c.bf16 %v1690_v27, %v1689_v25 }
 0x13c   : > { %v490_v29 = vpop.f32.mrf.mxu0 }
 0x13d   : > { %1618 = vst [vmem:[#allocation3 + $0x8] sm:$0xff] %v1506_v28   ;;  %v1501_v30 = vpack.c.bf16 %v490_v29, %v487_v26 }
 0x13e   : > { %v1693_v31 = vpop.f32.mrf.mxu0 }
 0x13f   : > { %1502 = vst [vmem:[#allocation3] sm:$0xff] %v1501_v30  }
 0x140   : > { %v503_v32 = vpop.f32.mrf.mxu0 }
 0x142   : > { %v1694_v33 = vpop.f32.mrf.mxu0 }
 0x143   : > { %v1516_v34 = vpack.c.bf16 %v1694_v33, %v1693_v31 }
 0x144   : > { %v506_v35 = vpop.f32.mrf.mxu0  ;;  %v1845_v55 = vld [vmem:[#allocation3 + $0x8] sm:$0xff]  }
 0x145   : > { %1620 = vst [vmem:[#allocation3 + $0x18] sm:$0xff] %v1516_v34   ;;  %v1511_v36 = vpack.c.bf16 %v506_v35, %v503_v32 }
 0x146   : > { %v1697_v37 = vpop.f32.mrf.mxu0  ;;  %v1846_v56 = vld [vmem:[#allocation3] sm:$0xff]  }
 0x147   : > { %1619 = vst [vmem:[#allocation3 + $0x10] sm:$0xff] %v1511_v36  }
 0x148   : > { %v519_v38 = vpop.f32.mrf.mxu0 }
 0x14a   : > { %v1698_v39 = vpop.f32.mrf.mxu0 }
 0x14b   : > { %v1526_v40 = vpack.c.bf16 %v1698_v39, %v1697_v37 }
 0x14c   : > { %v522_v41 = vpop.f32.mrf.mxu0  ;;  %v1843_v53 = vld [vmem:[#allocation3 + $0x18] sm:$0xff]  }
 0x14d   : > { %1622 = vst [vmem:[#allocation3 + $0x28] sm:$0xff] %v1526_v40   ;;  %v1521_v42 = vpack.c.bf16 %v522_v41, %v519_v38 }
 0x14e   : > { %v1701_v43 = vpop.f32.mrf.mxu0  ;;  %v1844_v54 = vld [vmem:[#allocation3 + $0x10] sm:$0xff]  }
 0x14f   : > { %1621 = vst [vmem:[#allocation3 + $0x20] sm:$0xff] %v1521_v42  }
 0x150   : > { %v535_v44 = vpop.f32.mrf.mxu0 }
 0x152   : > { %v1702_v45 = vpop.f32.mrf.mxu0 }
 0x153   : > { %v1536_v46 = vpack.c.bf16 %v1702_v45, %v1701_v43 }
 0x154   : > { %v538_v47 = vpop.f32.mrf.mxu0  ;;  %v1841_v51 = vld [vmem:[#allocation3 + $0x28] sm:$0xff]  }
 0x155   : > { %1624 = vst [vmem:[#allocation3 + $0x38] sm:$0xff] %v1536_v46   ;;  %v1531_v48 = vpack.c.bf16 %v538_v47, %v535_v44 }
 0x156   : > { %v1842_v52 = vld [vmem:[#allocation3 + $0x20] sm:$0xff]  }
 0x157   : > { %1623 = vst [vmem:[#allocation3 + $0x30] sm:$0xff] %v1531_v48  }
 0x15c   : > { %v1839_v49 = vld [vmem:[#allocation3 + $0x38] sm:$0xff]  }
 0x15d   : > { %1703 = vmatprep.subr.bf16.mxu1 %v1839_v49 }
 0x15e   : > { %v1840_v50 = vld [vmem:[#allocation3 + $0x30] sm:$0xff]   ;;  %1704 = vmatpush3.bf16.msra.mxu1 %v1839_v49 }
 0x15f   : > { %1705 = vmatprep.subr.bf16.mxu1 %v1840_v50 }
 0x162   : > { %1706 = vmatpush3.bf16.msra.mxu1 %v1840_v50 }
 0x163   : > { %1707 = vmatprep.subr.bf16.mxu1 %v1841_v51 }
 0x166   : > { %1708 = vmatpush3.bf16.msra.mxu1 %v1841_v51 }
 0x167   : > { %1709 = vmatprep.subr.bf16.mxu1 %v1842_v52 }
 0x16a   : > { %1710 = vmatpush3.bf16.msra.mxu1 %v1842_v52 }
 0x16b   : > { %1711 = vmatprep.subr.bf16.mxu1 %v1843_v53 }
 0x16e   : > { %1712 = vmatpush3.bf16.msra.mxu1 %v1843_v53 }
 0x16f   : > { %1713 = vmatprep.subr.bf16.mxu1 %v1844_v54 }
 0x172   : > { %1714 = vmatpush3.bf16.msra.mxu1 %v1844_v54 }
 0x173   : > { %1715 = vmatprep.subr.bf16.mxu1 %v1845_v55 }
 0x176   : > { %1716 = vmatpush3.bf16.msra.mxu1 %v1845_v55 }
 0x177   : > { %1717 = vmatprep.subr.bf16.mxu1 %v1846_v56 }
 0x17a   : > { %1718 = vmatpush3.bf16.msra.mxu1 %v1846_v56 }
 0x17d   : > { %1720 = vmatmul.mubr.bf16.vlgmr.msra.gmra.mxu1 %v1848_v57 }
 0x17e   : > { %1723 = vmatprep.mubr.bf16.mxu1 %v1849_v58 }
 0x185   : > { %1724 = vmatmul.mubr.bf16.gmra.mxu1 %v1850_v59 }
 0x186   : > { %1727 = vmatprep.mubr.bf16.mxu1 %v1851_v60 }
 0x18d   : > { %1728 = vmatmul.mubr.bf16.gmra.mxu1 %v1852_v61 }
 0x18e   : > { %1731 = vmatprep.mubr.bf16.mxu1 %v1853_v62 }
 0x195   : > { %1732 = vmatmul.mubr.bf16.gmra.mxu1 %v1854_v63 }
 0x23d   : > { %v1721_v0 = vpop.f32.mrf.mxu1 }
 0x23e   : > { %913 = vst [vmem:[#allocation4 + $0x58] sm:$0xff] %v1721_v0 }
 0x23f   : > { %v832_v1 = vpop.f32.mrf.mxu1 }
 0x240   : > { %911 = vst [vmem:[#allocation4 + $0x30] sm:$0xff] %v832_v1 }
 0x241   : > { %v1722_v2 = vpop.f32.mrf.mxu1 }
 0x242   : > { %914 = vst [vmem:[#allocation4 + $0x18] sm:$0xff] %v1722_v2 }
 0x243   : > { %v835_v3 = vpop.f32.mrf.mxu1 }
 0x244   : > { %912 = vst [vmem:[#allocation4] sm:$0xff] %v835_v3 }
 0x245   : > { %v1725_v4 = vpop.f32.mrf.mxu1  ;;  %v935_v21 = vld [vmem:[#allocation4 + $0x58] sm:$0xff] (%p278_p8) }
 0x246   : > { %917 = vst [vmem:[#allocation4 + $0x8] sm:$0xff] %v1725_v4  ;;  %v958_v24 = vadd.f32 (%p278_p8), %v1408_v18, %v935_v21 }
 0x247   : > { %v848_v5 = vpop.f32.mrf.mxu1  ;;  %v933_v16 = vld [vmem:[#allocation4 + $0x30] sm:$0xff] (%p278_p8) }
 0x248   : > { %915 = vst [vmem:[#allocation4 + $0x50] sm:$0xff] %v848_v5  ;;  %v956_v19 = vadd.f32 (%p278_p8), %v1408_v18, %v933_v16  ;;  %v974_v37 = vmax.f32 (%p278_p8), %v958_v24, 0.0 }
 0x249   : > { %v1726_v6 = vpop.f32.mrf.mxu1  ;;  %v936_v22 = vld [vmem:[#allocation4 + $0x18] sm:$0xff] (%p278_p8) }
 0x24a   : > { %918 = vst [vmem:[#allocation4 + $0x48] sm:$0xff] %v1726_v6  ;;  %v959_v25 = vadd.f32 (%p278_p8), %v1408_v18, %v936_v22  ;;  %v972_v30 = vmax.f32 (%p278_p8), %v956_v19, 0.0  ;;  %1074 = vst [vmem:[#allocation11 + $0x10] sm:$0xff] (%p278_p8), %v974_v37 }
 0x24b   : > { %v851_v7 = vpop.f32.mrf.mxu1  ;;  %v934_v17 = vld [vmem:[#allocation4] sm:$0xff] (%p278_p8) }
 0x24c   : > { %916 = vst [vmem:[#allocation4 + $0x68] sm:$0xff] %v851_v7  ;;  %v957_v20 = vadd.f32 (%p278_p8), %v1408_v18, %v934_v17  ;;  %v975_v38 = vmax.f32 (%p278_p8), %v959_v25, 0.0  ;;  %1072 = vst [vmem:[#allocation11] sm:$0xff] (%p278_p8), %v972_v30 }
 0x24d   : > { %v1729_v8 = vpop.f32.mrf.mxu1  ;;  %v939_v28 = vld [vmem:[#allocation4 + $0x8] sm:$0xff] (%p278_p8) }
 0x24e   : > { %921 = vst [vmem:[#allocation4 + $0x10] sm:$0xff] %v1729_v8  ;;  %v973_v31 = vmax.f32 (%p278_p8), %v957_v20, 0.0  ;;  %v962_v33 = vadd.f32 (%p278_p8), %v1408_v18, %v939_v28  ;;  %v1546_v48 = vpack.c.bf16 (%p278_p8), %v975_v38, %v974_v37  ;;  %1075 = vst [vmem:[#allocation11 + $0x18] sm:$0xff] (%p278_p8), %v975_v38 }
 0x24f   : > { %v864_v9 = vpop.f32.mrf.mxu1  ;;  %v937_v23 = vld [vmem:[#allocation4 + $0x50] sm:$0xff] (%p278_p8) }
 0x250   : > { %919 = vst [vmem:[#allocation4 + $0x40] sm:$0xff] %v864_v9  ;;  %v960_v27 = vadd.f32 (%p278_p8), %v1408_v18, %v937_v23  ;;  %v1541_v43 = vpack.c.bf16 (%p278_p8), %v973_v31, %v972_v30  ;;  %1073 = vst [vmem:[#allocation11 + $0x8] sm:$0xff] (%p278_p8), %v973_v31  ;;  %v978_v45 = vmax.f32 (%p278_p8), %v962_v33, 0.0 }
 0x251   : > { %v1730_v10 = vpop.f32.mrf.mxu1  ;;  %v940_v29 = vld [vmem:[#allocation4 + $0x48] sm:$0xff] (%p278_p8)  ;;  %1625 = vst [vmem:[#allocation2 + $0x8] sm:$0xff] (%p278_p8), %v1546_v48  }
 0x252   : > { %922 = vst [vmem:[#allocation4 + $0x38] sm:$0xff] %v1730_v10  ;;  %v976_v39 = vmax.f32 (%p278_p8), %v960_v27, 0.0  ;;  %v963_v40 = vadd.f32 (%p278_p8), %v1408_v18, %v940_v29  ;;  %1542 = vst [vmem:[#allocation2] sm:$0xff] (%p278_p8), %v1541_v43  }
 0x253   : > { %v867_v11 = vpop.f32.mrf.mxu1  ;;  %v938_v26 = vld [vmem:[#allocation4 + $0x68] sm:$0xff] (%p278_p8)  ;;  %1078 = vst [vmem:[#allocation11 + $0x30] sm:$0xff] (%p278_p8), %v978_v45 }
 0x254   : > { %920 = vst [vmem:[#allocation4 + $0x20] sm:$0xff] %v867_v11  ;;  %v961_v32 = vadd.f32 (%p278_p8), %v1408_v18, %v938_v26  ;;  %1076 = vst [vmem:[#allocation11 + $0x20] sm:$0xff] (%p278_p8), %v976_v39  ;;  %v979_v49 = vmax.f32 (%p278_p8), %v963_v40, 0.0 }
 0x255   : > { %v1733_v12 = vpop.f32.mrf.mxu1  ;;  %v943_v36 = vld [vmem:[#allocation4 + $0x10] sm:$0xff] (%p278_p8) }
 0x256   : > { %925 = vst [vmem:[#allocation4 + $0x78] sm:$0xff] %v1733_v12  ;;  %v977_v44 = vmax.f32 (%p278_p8), %v961_v32, 0.0  ;;  %v966_v51 = vadd.f32 (%p278_p8), %v1408_v18, %v943_v36  ;;  %v1556_v58 = vpack.c.bf16 (%p278_p8), %v979_v49, %v978_v45  ;;  %1079 = vst [vmem:[#allocation11 + $0x38] sm:$0xff] (%p278_p8), %v979_v49 }
 0x257   : > { %v880_v13 = vpop.f32.mrf.mxu1  ;;  %v941_v34 = vld [vmem:[#allocation4 + $0x40] sm:$0xff] (%p278_p8) }
 0x258   : > { %923 = vst [vmem:[#allocation4 + $0x60] sm:$0xff] %v880_v13  ;;  %932 = sbr.rel (!%p278_p8) target bundleno = 619 (0x26b), region = 64  ;;  %v964_v46 = vadd.f32 (%p278_p8), %v1408_v18, %v941_v34  ;;  %v1551_v54 = vpack.c.bf16 (%p278_p8), %v977_v44, %v976_v39  ;;  %1077 = vst [vmem:[#allocation11 + $0x28] sm:$0xff] (%p278_p8), %v977_v44  ;;  %v982_v60 = vmax.f32 (%p278_p8), %v966_v51, 0.0 }
 0x259   : > { %v1734_v14 = vpop.f32.mrf.mxu1  ;;  %v944_v41 = vld [vmem:[#allocation4 + $0x38] sm:$0xff] (%p278_p8)  ;;  %1627 = vst [vmem:[#allocation2 + $0x18] sm:$0xff] (%p278_p8), %v1556_v58  }
 0x25a   : > { %926 = vst [vmem:[#allocation4 + $0x28] sm:$0xff] %v1734_v14  ;;  %v980_v55 = vmax.f32 (%p278_p8), %v964_v46, 0.0  ;;  %v967_v56 = vadd.f32 (%p278_p8), %v1408_v18, %v944_v41  ;;  %1626 = vst [vmem:[#allocation2 + $0x10] sm:$0xff] (%p278_p8), %v1551_v54  }
 0x25b   : > { %v883_v15 = vpop.f32.mrf.mxu1  ;;  %v942_v35 = vld [vmem:[#allocation4 + $0x20] sm:$0xff] (%p278_p8)  ;;  %1082 = vst [vmem:[#allocation11 + $0x50] sm:$0xff] (%p278_p8), %v982_v60 }
 0x25c   : > { %924 = vst [vmem:[#allocation4 + $0x70] sm:$0xff] %v883_v15  ;;  %v965_v50 = vadd.f32 (%p278_p8), %v1408_v18, %v942_v35  ;;  %1080 = vst [vmem:[#allocation11 + $0x40] sm:$0xff] (%p278_p8), %v980_v55  ;;  %v983_v62 = vmax.f32 (%p278_p8), %v967_v56, 0.0 }
 0x25d   : > { %v947_v52 = vld [vmem:[#allocation4 + $0x78] sm:$0xff] }
 0x25e   : > { %v981_v59 = vmax.f32 %v965_v50, 0.0  ;;  %v970_v0 = vadd.f32 %v1408_v18, %v947_v52  ;;  %v1566_v4 = vpack.c.bf16 %v983_v62, %v982_v60  ;;  %1083 = vst [vmem:[#allocation11 + $0x58] sm:$0xff] %v983_v62 }
 0x25f   : > { %v945_v42 = vld [vmem:[#allocation4 + $0x60] sm:$0xff] }
 0x260   : > { %v968_v57 = vadd.f32 %v1408_v18, %v945_v42  ;;  %v1561_v2 = vpack.c.bf16 %v981_v59, %v980_v55  ;;  %1081 = vst [vmem:[#allocation11 + $0x48] sm:$0xff] %v981_v59  ;;  %v986_v5 = vmax.f32 %v970_v0, 0.0  ;;  %1629 = vst [vmem:[#allocation2 + $0x28] sm:$0xff] %v1566_v4  }
 0x261   : > { %v948_v53 = vld [vmem:[#allocation4 + $0x28] sm:$0xff] }
 0x262   : > { %v984_v63 = vmax.f32 %v968_v57, 0.0  ;;  %v971_v1 = vadd.f32 %v1408_v18, %v948_v53  ;;  %1628 = vst [vmem:[#allocation2 + $0x20] sm:$0xff] %v1561_v2   ;;  %1086 = vst [vmem:[#allocation11 + $0x70] sm:$0xff] %v986_v5 }
 0x263   : > { %v946_v47 = vld [vmem:[#allocation4 + $0x70] sm:$0xff] }
 0x264   : > { %v969_v61 = vadd.f32 %v1408_v18, %v946_v47  ;;  %1084 = vst [vmem:[#allocation11 + $0x60] sm:$0xff] %v984_v63  ;;  %v987_v6 = vmax.f32 %v971_v1, 0.0 }
 0x266   : > { %v985_v3 = vmax.f32 %v969_v61, 0.0  ;;  %v1576_v8 = vpack.c.bf16 %v987_v6, %v986_v5  ;;  %1087 = vst [vmem:[#allocation11 + $0x78] sm:$0xff] %v987_v6 }
 0x268   : > { %v1571_v7 = vpack.c.bf16 %v985_v3, %v984_v63  ;;  %1085 = vst [vmem:[#allocation11 + $0x68] sm:$0xff] %v985_v3  ;;  %1631 = vst [vmem:[#allocation2 + $0x38] sm:$0xff] %v1576_v8  }
 0x26a   : > { %1630 = vst [vmem:[#allocation2 + $0x30] sm:$0xff] %v1571_v7  }
 0x26b PF: > { %p1088_p7 = scmp.eq.s32.totalorder %s2013_s18, 2 }
 0x26c   : > { %v1093_v9 = vld [vmem:[#allocation4 + $0x30] sm:$0xff] (%p1088_p7)  ;;  %v1094_v10 = vld [vmem:[#allocation4] sm:$0xff] (%p1088_p7)  ;;  %v1095_v14 = vld [vmem:[#allocation4 + $0x58] sm:$0xff] (%p1088_p7) }
 0x26d   : > { %1092 = sbr.rel (!%p1088_p7) target bundleno = 636 (0x27c), region = 68  ;;  %v1426_v11 = vld [vmem:[%s2188_s5] ss:$0 sm:$0xff] (%p1088_p7)  ;;  %v1096_v15 = vld [vmem:[#allocation4 + $0x18] sm:$0xff] (%p1088_p7)  ;;  %v1097_v16 = vld [vmem:[#allocation4 + $0x50] sm:$0xff] (%p1088_p7) }
 0x26e   : > { %v1116_v12 = vadd.f32 (%p1088_p7), %v1426_v11, %v1093_v9  ;;  %v1117_v13 = vadd.f32 (%p1088_p7), %v1426_v11, %v1094_v10  ;;  %v1118_v17 = vadd.f32 (%p1088_p7), %v1426_v11, %v1095_v14  ;;  %v1119_v18 = vadd.f32 (%p1088_p7), %v1426_v11, %v1096_v15  ;;  %v1098_v19 = vld [vmem:[#allocation4 + $0x68] sm:$0xff] (%p1088_p7)  ;;  %v1101_v27 = vld [vmem:[#allocation4 + $0x40] sm:$0xff] (%p1088_p7)  ;;  %v1103_v29 = vld [vmem:[#allocation4 + $0x10] sm:$0xff] (%p1088_p7) }
 0x26f   : > { %v1120_v20 = vadd.f32 (%p1088_p7), %v1426_v11, %v1097_v16  ;;  %v1099_v21 = vld [vmem:[#allocation4 + $0x8] sm:$0xff] (%p1088_p7)  ;;  %v1121_v24 = vadd.f32 (%p1088_p7), %v1426_v11, %v1098_v19  ;;  %v1102_v28 = vld [vmem:[#allocation4 + $0x20] sm:$0xff] (%p1088_p7)  ;;  %v1124_v31 = vadd.f32 (%p1088_p7), %v1426_v11, %v1101_v27  ;;  %v1104_v33 = vld [vmem:[#allocation4 + $0x38] sm:$0xff] (%p1088_p7)  ;;  %v1126_v34 = vadd.f32 (%p1088_p7), %v1426_v11, %v1103_v29 }
 0x270   : > { %v1100_v22 = vld [vmem:[#allocation4 + $0x48] sm:$0xff] (%p1088_p7)  ;;  %v1581_v23 = vpack.c.bf16 (%p1088_p7), %v1117_v13, %v1116_v12  ;;  %1216 = vst [vmem:[#allocation11] sm:$0xff] (%p1088_p7), %v1116_v12  ;;  %1217 = vst [vmem:[#allocation11 + $0x8] sm:$0xff] (%p1088_p7), %v1117_v13  ;;  %v1122_v25 = vadd.f32 (%p1088_p7), %v1426_v11, %v1099_v21  ;;  %v1586_v30 = vpack.c.bf16 (%p1088_p7), %v1119_v18, %v1118_v17  ;;  %v1105_v35 = vld [vmem:[#allocation4 + $0x60] sm:$0xff] (%p1088_p7) }
 0x271   : > { %v1123_v26 = vadd.f32 (%p1088_p7), %v1426_v11, %v1100_v22  ;;  %1218 = vst [vmem:[#allocation11 + $0x10] sm:$0xff] (%p1088_p7), %v1118_v17  ;;  %1219 = vst [vmem:[#allocation11 + $0x18] sm:$0xff] (%p1088_p7), %v1119_v18  ;;  %v1125_v32 = vadd.f32 (%p1088_p7), %v1426_v11, %v1102_v28  ;;  %v1106_v36 = vld [vmem:[#allocation4 + $0x70] sm:$0xff] (%p1088_p7)  ;;  %v1591_v37 = vpack.c.bf16 (%p1088_p7), %v1121_v24, %v1120_v20  ;;  %v1107_v41 = vld [vmem:[#allocation4 + $0x78] sm:$0xff] (%p1088_p7) }
 0x272   : > { %1220 = vst [vmem:[#allocation11 + $0x20] sm:$0xff] %v1120_v20  ;;  %1582 = vst [vmem:[#allocation2] sm:$0xff] %v1581_v23   ;;  %v1127_v39 = vadd.f32 %v1426_v11, %v1104_v33  ;;  %v1128_v40 = vadd.f32 %v1426_v11, %v1105_v35  ;;  %v1108_v42 = vld [vmem:[#allocation4 + $0x28] sm:$0xff]  ;;  %v1129_v44 = vadd.f32 %v1426_v11, %v1106_v36 }
 0x273   : > { %1221 = vst [vmem:[#allocation11 + $0x28] sm:$0xff] %v1121_v24  ;;  %v1596_v38 = vpack.c.bf16 %v1123_v26, %v1122_v25  ;;  %1222 = vst [vmem:[#allocation11 + $0x30] sm:$0xff] %v1122_v25  ;;  %v1601_v43 = vpack.c.bf16 %v1125_v32, %v1124_v31  ;;  %v1130_v45 = vadd.f32 %v1426_v11, %v1107_v41 }
 0x274   : > { %1223 = vst [vmem:[#allocation11 + $0x38] sm:$0xff] %v1123_v26  ;;  %1632 = vst [vmem:[#allocation2 + $0x8] sm:$0xff] %v1586_v30   ;;  %v1131_v46 = vadd.f32 %v1426_v11, %v1108_v42  ;;  %v1606_v47 = vpack.c.bf16 %v1127_v39, %v1126_v34  ;;  %v1611_v48 = vpack.c.bf16 %v1129_v44, %v1128_v40 }
 0x275   : > { %1224 = vst [vmem:[#allocation11 + $0x40] sm:$0xff] %v1124_v31  ;;  %1225 = vst [vmem:[#allocation11 + $0x48] sm:$0xff] %v1125_v32 }
 0x276   : > { %1226 = vst [vmem:[#allocation11 + $0x50] sm:$0xff] %v1126_v34  ;;  %1633 = vst [vmem:[#allocation2 + $0x10] sm:$0xff] %v1591_v37   ;;  %v1616_v49 = vpack.c.bf16 %v1131_v46, %v1130_v45 }
 0x277   : > { %1634 = vst [vmem:[#allocation2 + $0x18] sm:$0xff] %v1596_v38   ;;  %1227 = vst [vmem:[#allocation11 + $0x58] sm:$0xff] %v1127_v39 }
 0x278   : > { %1228 = vst [vmem:[#allocation11 + $0x60] sm:$0xff] %v1128_v40  ;;  %1635 = vst [vmem:[#allocation2 + $0x20] sm:$0xff] %v1601_v43  }
 0x279   : > { %1229 = vst [vmem:[#allocation11 + $0x68] sm:$0xff] %v1129_v44  ;;  %1230 = vst [vmem:[#allocation11 + $0x70] sm:$0xff] %v1130_v45 }
 0x27a   : > { %1231 = vst [vmem:[#allocation11 + $0x78] sm:$0xff] %v1131_v46  ;;  %1636 = vst [vmem:[#allocation2 + $0x28] sm:$0xff] %v1606_v47  }
 0x27b   : > { %1637 = vst [vmem:[#allocation2 + $0x30] sm:$0xff] %v1611_v48   ;;  %1638 = vst [vmem:[#allocation2 + $0x38] sm:$0xff] %v1616_v49  }
 0x27c PF: > { %p1765_p9 = scmp.eq.s32.totalorder %s2085_s21, 2  ;;  %s2028_s18 = smov [#allocation11]  }
 0x27d   : > { %s1241_s22 = sshll.u32 %s2028_s18, 4  ;;  %s1242_s22 = int_to_ptr.vmem [resolvable:$true] %s1241_s22 }
 0x27e   : > { %s1935_s6 = scalar_lea.vmem %s1242_s22, 2048  ;;  %p1942_p0 = scmp.lt.s32.totalorder %s1242_s22, %s1242_s22 }
 0x27f   : > { %p1936_p5 = scmp.ne.s32.totalorder %s1242_s22, %s1935_s6  ;;  %p1943_p1 = scmp.lt.s32.totalorder %s1935_s6, %s1935_s6 }
 0x281   : > { %p1937_p3 = pnand %p1936_p5, %p1765_p9  ;;  %p1944_p2 = por %p1943_p1, %p1942_p0 }
 0x283   : > { %p1938_p11 = pneg %p1937_p3 }
 0x285   : > { %p1945_p4 = pnand %p1944_p2, %p1938_p11 }
 0x287   : > { %1948 = shalt.err (!%p1945_p4)
}
 0x288   : > { %s2029_s7 = smov 128   ;;  %s2030_s9 = smov 8  }
 0x289   : > { %1746 = dma.vmem_to_hbm [thread:$0]  (%p1765_p9), %s1242_s22, 2048, %s2238_s4, [#allocation7], %s2029_s7, %s2029_s7, %s2030_s9  }
 0x28a   : > { %1996 = dma.done.wait (%p1765_p9), [#allocation7], 2048  }
 0x28b   : > { %1998 = vsyncadd (%p1765_p9), [#allocation7], 4294965248 }
 0x28c PF: > { %s17_s20 = sadd.s32 1, %s2021_s20   ;;  %s2250_s15 = smov %s2005_s16 }
 0x28d   : > { %p14_p13 = scmp.ge.s32.totalorder %s17_s20, 5   ;;  %s2251_s16 = smov %s2009_s17 }
 0x28e   : > { %s2252_s17 = smov %s2154_s8  ;;  %s2253_s18 = smov %s2017_s19 }
 0x28f   : > { %s2254_s19 = smov %s2256_s12  ;;  %16 = sbr.rel (!%p14_p13) target bundleno = 5 (0x5), region = 108 }
 0x294   :  { %1257 = vsyncpa [#allocation6], 1 }
 0x295   :  { %1259 = vsyncpa [#allocation6 + $0x1], 1 }
 0x296   :  { %1260 = vsyncpa [#allocation9], 1 }
 0x297   :  { %1261 = vsyncpa [#allocation7], 1 }
 0x298   :  { %1263 = vsyncpa [#allocation7 + $0x1], 1 }

</bundles_post_ra>
